<compile_context>
chip_gen: v5e
topology: v5e:2x2
jax: 0.10.0
libtpu: 0.0.40
codegen_flags: <defaults>
</compile_context>

<pallas_src>
import functools

import jax
import jax.numpy as jnp
import numpy as np
from jax.experimental import pallas as pl
from jax.experimental.pallas import tpu as pltpu


# ----------------------------------------------------------------------------
# Stage 1: per-image block mask (0/1, bf16) + global keep count (SMEM scalar)
# ----------------------------------------------------------------------------
def _mask_kernel(gamma_ref, u_ref, mask_ref, denom_ref, denom_sc, *, block_size):
    # gamma_ref: SMEM (1,) f32 ; u_ref: VMEM (H, W) f32 uniform [0,1)
    # mask_ref:  VMEM (H, W) bf16 {0,1} block mask for this image
    # denom_ref: SMEM (1,1) f32 global keep count (written on last step)
    # denom_sc:  SMEM (1,)  f32 running keep-count accumulator
    n = pl.program_id(0)
    num_imgs = pl.num_programs(0)
    H, W = u_ref.shape
    pad = block_size // 2
    gamma = gamma_ref[0]

    @pl.when(n == 0)
    def _():
        denom_sc[0] = 0.0

    seed = (u_ref[...] < gamma).astype(jnp.float32)            # (H, W) {0,1}

    # Separable stride-1 max-pool of a binary mask via banded-ones matmuls:
    #   pooled > 0  <=>  (A_h @ seed @ A_w) > 0   (window sum, then threshold)
    ih = jax.lax.broadcasted_iota(jnp.int32, (H, H), 0)
    jh = jax.lax.broadcasted_iota(jnp.int32, (H, H), 1)
    A_h = (jnp.abs(ih - jh) <= pad).astype(jnp.float32)        # (H, H)
    iw = jax.lax.broadcasted_iota(jnp.int32, (W, W), 0)
    jw = jax.lax.broadcasted_iota(jnp.int32, (W, W), 1)
    A_w = (jnp.abs(iw - jw) <= pad).astype(jnp.float32)        # (W, W)

    s = jnp.dot(A_h, seed, preferred_element_type=jnp.float32)
    s = jnp.dot(s, A_w, preferred_element_type=jnp.float32)
    bm = jnp.where(s > 0.0, 0.0, 1.0)                          # kept positions

    mask_ref[...] = bm.astype(mask_ref.dtype)
    denom_sc[0] = denom_sc[0] + jnp.sum(bm)

    @pl.when(n == num_imgs - 1)
    def _():
        denom_ref[0, 0] = denom_sc[0]


# ----------------------------------------------------------------------------
# Stage 2: pipelined elementwise apply on the lane-dense (N, C', L) view
# ----------------------------------------------------------------------------
def _apply_kernel(denom_ref, x_ref, m_ref, o_ref, *, numel):
    # denom_ref: SMEM (1,1) keep count ; x_ref: (c_blk, L) ; m_ref: (1, L) bf16
    scale = jnp.float32(numel) / denom_ref[0, 0]       # matches PyTorch (inf if all dropped)
    xv = x_ref[...].astype(jnp.float32)
    mv = m_ref[...].astype(jnp.float32)
    o_ref[...] = (xv * mv * scale).astype(o_ref.dtype)


# ----------------------------------------------------------------------------
# Tiling helpers
# ----------------------------------------------------------------------------
def _lane_fold_factor(C, HW):
    """Fold k channels into the lane dim so the last dim is lane-dense."""
    if HW % 128 == 0 or C <= 1:
        return 1
    for k in range(2, C + 1):                       # exact multiple of 128 lanes
        if C % k == 0 and (k * HW) % 128 == 0:
            return k
    for k in range(2, C + 1):                       # fallback: long rows (>=1024)
        if C % k == 0 and k * HW >= 1024:
            return k
    return 1


def _stage2_tiling(C2, L, itemsize):
    pack = {4: 8, 2: 16, 1: 32}.get(int(itemsize), 8)   # native sublane packing
    try:
        vmem_cap = int(pltpu.get_tpu_info().vmem_capacity_bytes)
    except Exception:
        vmem_cap = 64 * 1024 * 1024                     # v7x-sized safe floor
    if vmem_cap < 32 * 1024 * 1024:
        vmem_cap = 64 * 1024 * 1024
    vmem_limit = int(min(vmem_cap * 3 // 4, 96 * 1024 * 1024))   # 48M v7x / 96M v5e,v6e
    vmem_limit = max(vmem_limit, 32 * 1024 * 1024)
    # Double-buffered in+out tiles ~= 4x the tile bytes; budget ~limit/12 per tile.
    target_bytes = max(2 * 1024 * 1024, vmem_limit // 12)
    cb = max(1, target_bytes // max(1, L * int(itemsize)))
    if cb >= C2:
        return C2, pack, vmem_limit
    return max(pack, (cb // pack) * pack), pack, vmem_limit


# ----------------------------------------------------------------------------
# Forward
# ----------------------------------------------------------------------------
@functools.partial(jax.jit, static_argnames=("block_size",))
def dropblock_forward(x, key, gamma, block_size):
    N, C, H, W = x.shape
    HW = H * W

    # One batched uniform draw for all (N, H, W) seed positions.
    u = jax.random.uniform(key, (N, H, W), dtype=jnp.float32)
    gamma_arr = jnp.reshape(gamma.astype(jnp.float32), (1,))

    # --- Stage 1: unscaled {0,1} block mask + global keep count --------------
    bm, denom = pl.pallas_call(
        functools.partial(_mask_kernel, block_size=block_size),
        grid=(N,),
        out_shape=(
            jax.ShapeDtypeStruct((N, H, W), jnp.bfloat16),
            jax.ShapeDtypeStruct((1, 1), jnp.float32),
        ),
        in_specs=[
            pl.BlockSpec(memory_space=pltpu.MemorySpace.SMEM),      # gamma
            pl.BlockSpec((None, H, W), lambda n: (n, 0, 0)),        # uniforms
        ],
        out_specs=(
            pl.BlockSpec((None, H, W), lambda n: (n, 0, 0)),        # block mask
            pl.BlockSpec(memory_space=pltpu.MemorySpace.SMEM),      # keep count
        ),
        scratch_shapes=[pltpu.SMEM((1,), jnp.float32)],
        compiler_params=pltpu.CompilerParams(
            dimension_semantics=("arbitrary",),                     # carries the count
        ),
    )(gamma_arr, u)

    # --- Stage 2: pipelined multiply on lane-dense (N, C//k, k*HW) -----------
    k = _lane_fold_factor(C, HW)
    C2, L = C // k, k * HW
    x2 = x.reshape(N, C2, L)
    m3 = bm.reshape(N, 1, HW)
    if k > 1:
        m3 = jnp.tile(m3, (1, 1, k))                 # same spatial mask per folded channel

    c_blk, pack, vmem_limit = _stage2_tiling(C2, L, x.dtype.itemsize)
    # v7x megacore: keep >=2 grid steps on a "parallel" axis when possible.
    if N * pl.cdiv(C2, c_blk) < 2 and C2 >= 2 * pack:
        c_blk = max(pack, (C2 // 2 // pack) * pack)
    grid = (N, pl.cdiv(C2, c_blk))

    numel = float(N * H * W)                          # block_mask.numel()
    out2 = pl.pallas_call(
        functools.partial(_apply_kernel, numel=numel),
        grid=grid,
        out_shape=jax.ShapeDtypeStruct((N, C2, L), x.dtype),
        in_specs=[
            pl.BlockSpec(memory_space=pltpu.MemorySpace.SMEM),          # keep count
            pl.BlockSpec((None, c_blk, L), lambda n, c: (n, c, 0)),     # x tile
            pl.BlockSpec((None, 1, L), lambda n, c: (n, 0, 0)),         # mask row
        ],
        out_specs=pl.BlockSpec((None, c_blk, L), lambda n, c: (n, c, 0)),
        compiler_params=pltpu.CompilerParams(
            dimension_semantics=("parallel", "parallel"),
            vmem_limit_bytes=int(vmem_limit),
        ),
    )(denom, x2, m3)

    return out2.reshape(N, C, H, W)


# ----------------------------------------------------------------------------
# Module mirrors
# ----------------------------------------------------------------------------
class DropBlock2DPallas:
    """DropBlock2D whose forward hot path runs in the Pallas kernels above."""

    def __init__(self, drop_prob, block_size, training=True, seed=0):
        assert block_size % 2 == 1, "only odd block_size supported"
        self.drop_prob = float(drop_prob)
        self.block_size = int(block_size)
        self.training = training
        self._key = jax.random.PRNGKey(seed)

    def __call__(self, x):
        if (not self.training) or self.drop_prob == 0.0:
            return x
        self._key, sub = jax.random.split(self._key)
        gamma = jnp.float32(self.drop_prob / (self.block_size ** 2))
        return dropblock_forward(x, sub, gamma, self.block_size)


class LinearScheduler:
    """Mirror of the PyTorch LinearScheduler; forward == dropblock(x)."""

    def __init__(self, dropblock, start_value, stop_value, nr_steps):
        self.dropblock = dropblock
        self.i = 0
        self.drop_values = np.linspace(start=start_value, stop=stop_value, num=int(nr_steps))

    def __call__(self, x):
        return self.dropblock(x)

    forward = __call__

    def step(self):
        if self.i < len(self.drop_values):
            self.dropblock.drop_prob = float(self.drop_values[self.i])
        self.i += 1


if __name__ == "__main__":
    key = jax.random.PRNGKey(0)
    x = jax.random.normal(key, (2, 4, 16, 16), dtype=jnp.float32)  # NCHW

    dropblock = DropBlock2DPallas(drop_prob=0.1, block_size=3, training=True)
    scheduler = LinearScheduler(dropblock, start_value=0.0, stop_value=0.25, nr_steps=5)

    # Anneal drop_prob a couple of steps, then run the forward pass.
    scheduler.step()
    scheduler.step()
    scheduler.step()

    out = scheduler(x)
    out = jax.block_until_ready(out)
    assert out.shape == x.shape and out.dtype == x.dtype
    assert bool(jnp.all(jnp.isfinite(out)))
    print("KERNEL_OK")
</pallas_src>

<mosaic_0001>
module attributes {stable_mosaic.version = 11 : i64} {
  func.func @_mask_kernel(%arg0: i32, %arg1: memref<1xf32, #tpu.memory_space<smem>>, %arg2: memref<1x16x16xf32, #tpu.memory_space<vmem>>, %arg3: memref<1x16x16xbf16, #tpu.memory_space<vmem>>, %arg4: memref<1x1xf32, #tpu.memory_space<smem>>, %arg5: memref<1xf32, #tpu.memory_space<smem>>) attributes {dimension_semantics = [#tpu.dimension_semantics<arbitrary>], iteration_bounds = array<i64: 2>, scalar_prefetch = 0 : i64, scratch_operands = 1 : i64, tpu.core_type = #tpu.core_type<tc>, window_params = [{transform_indices = @transform_0, window_bounds = array<i64: 1>}, {transform_indices = @transform_1, window_bounds = array<i64: 1, 16, 16>}, {transform_indices = @transform_2, window_bounds = array<i64: 1, 16, 16>}, {transform_indices = @transform_3, window_bounds = array<i64: 1, 1>}]} {
    %c0 = arith.constant 0 : index
    %0 = memref.load %arg1[%c0] : memref<1xf32, #tpu.memory_space<smem>>
    %c0_i32 = arith.constant 0 : i32
    %1 = arith.cmpi eq, %arg0, %c0_i32 : i32
    %2 = arith.extui %1 : i1 to i32
    %c0_i32_0 = arith.constant 0 : i32
    %3 = arith.cmpi ne, %2, %c0_i32_0 : i32
    scf.if %3 {
      %cst_17 = arith.constant 0.000000e+00 : f32
      %c0_18 = arith.constant 0 : index
      %47 = memref.load %arg5[%c0_18] : memref<1xf32, #tpu.memory_space<smem>>
      memref.store %cst_17, %arg5[%c0_18] : memref<1xf32, #tpu.memory_space<smem>>
    } else {
    }
    %c0_1 = arith.constant 0 : index
    %c0_2 = arith.constant 0 : index
    %c0_3 = arith.constant 0 : index
    %4 = vector.load %arg2[%c0_1, %c0_2, %c0_3] : memref<1x16x16xf32, #tpu.memory_space<vmem>>, vector<1x16x16xf32>
    %5 = vector.shape_cast %4 : vector<1x16x16xf32> to vector<16x16xf32>
    %6 = vector.broadcast %0 : f32 to vector<16x16xf32>
    %7 = arith.cmpf olt, %5, %6 : vector<16x16xf32>
    %8 = arith.extui %7 : vector<16x16xi1> to vector<16x16xi32>
    %9 = arith.sitofp %8 : vector<16x16xi32> to vector<16x16xf32>
    %10 = tpu.iota {dimensions = array<i32: 0>} : vector<16x16xi32>
    %11 = tpu.iota {dimensions = array<i32: 1>} : vector<16x16xi32>
    %12 = arith.subi %10, %11 : vector<16x16xi32>
    %13 = math.absi %12 : vector<16x16xi32>
    %c1_i32 = arith.constant 1 : i32
    %14 = vector.broadcast %c1_i32 : i32 to vector<16x16xi32>
    %15 = arith.cmpi sle, %13, %14 : vector<16x16xi32>
    %16 = arith.extui %15 : vector<16x16xi1> to vector<16x16xi32>
    %17 = arith.sitofp %16 : vector<16x16xi32> to vector<16x16xf32>
    %18 = tpu.iota {dimensions = array<i32: 0>} : vector<16x16xi32>
    %19 = tpu.iota {dimensions = array<i32: 1>} : vector<16x16xi32>
    %20 = arith.subi %18, %19 : vector<16x16xi32>
    %21 = math.absi %20 : vector<16x16xi32>
    %c1_i32_4 = arith.constant 1 : i32
    %22 = vector.broadcast %c1_i32_4 : i32 to vector<16x16xi32>
    %23 = arith.cmpi sle, %21, %22 : vector<16x16xi32>
    %24 = arith.extui %23 : vector<16x16xi1> to vector<16x16xi32>
    %25 = arith.sitofp %24 : vector<16x16xi32> to vector<16x16xf32>
    %cst = arith.constant dense<0.000000e+00> : vector<16x16xf32>
    %26 = tpu.matmul %17, %9, %cst {dimension_numbers = #tpu.dot_dimension_numbers<[1], [0], [0], [1], [0, 0, 1, 1], [], []>} : vector<16x16xf32>, vector<16x16xf32>, vector<16x16xf32> -> vector<16x16xf32>
    %cst_5 = arith.constant dense<0.000000e+00> : vector<16x16xf32>
    %27 = tpu.matmul %26, %25, %cst_5 {dimension_numbers = #tpu.dot_dimension_numbers<[1], [0], [0], [1], [0, 0, 1, 1], [], []>} : vector<16x16xf32>, vector<16x16xf32>, vector<16x16xf32> -> vector<16x16xf32>
    %cst_6 = arith.constant 0.000000e+00 : f32
    %28 = vector.broadcast %cst_6 : f32 to vector<16x16xf32>
    %29 = arith.cmpf ogt, %27, %28 : vector<16x16xf32>
    %cst_7 = arith.constant 0.000000e+00 : f32
    %cst_8 = arith.constant 1.000000e+00 : f32
    %30 = vector.broadcast %cst_7 : f32 to vector<16x16xf32>
    %31 = vector.broadcast %cst_8 : f32 to vector<16x16xf32>
    %32 = arith.select %29, %30, %31 : vector<16x16xi1>, vector<16x16xf32>
    %33 = arith.truncf %32 : vector<16x16xf32> to vector<16x16xbf16>
    %c0_9 = arith.constant 0 : index
    %c0_10 = arith.constant 0 : index
    %c0_11 = arith.constant 0 : index
    %34 = vector.load %arg3[%c0_9, %c0_10, %c0_11] : memref<1x16x16xbf16, #tpu.memory_space<vmem>>, vector<1x16x16xbf16>
    %35 = vector.shape_cast %34 : vector<1x16x16xbf16> to vector<16x16xbf16>
    %36 = vector.shape_cast %33 : vector<16x16xbf16> to vector<1x16x16xbf16>
    tpu.vector_store %arg3[%c0_9, %c0_10, %c0_11], %36 {strides = array<i32>} : memref<1x16x16xbf16, #tpu.memory_space<vmem>>, vector<1x16x16xbf16>,
    %c0_12 = arith.constant 0 : index
    %37 = memref.load %arg5[%c0_12] : memref<1xf32, #tpu.memory_space<smem>>
    %38 = vector.shape_cast %32 : vector<16x16xf32> to vector<1x16x16xf32>
    %cst_13 = arith.constant dense<0.000000e+00> : vector<1xf32>
    %39 = vector.multi_reduction <add>, %38, %cst_13 [1, 2] : vector<1x16x16xf32> to vector<1xf32>
    %40 = vector.shape_cast %39 : vector<1xf32> to vector<1x1x1xf32>
    %41 = vector.extract %40[0, 0, 0] : f32 from vector<1x1x1xf32>
    %42 = arith.addf %37, %41 : f32
    %c0_14 = arith.constant 0 : index
    %43 = memref.load %arg5[%c0_14] : memref<1xf32, #tpu.memory_space<smem>>
    memref.store %42, %arg5[%c0_14] : memref<1xf32, #tpu.memory_space<smem>>
    %c1_i32_15 = arith.constant 1 : i32
    %44 = arith.cmpi eq, %arg0, %c1_i32_15 : i32
    %45 = arith.extui %44 : i1 to i32
    %c0_i32_16 = arith.constant 0 : i32
    %46 = arith.cmpi ne, %45, %c0_i32_16 : i32
    scf.if %46 {
      %c0_17 = arith.constant 0 : index
      %47 = memref.load %arg5[%c0_17] : memref<1xf32, #tpu.memory_space<smem>>
      %c0_18 = arith.constant 0 : index
      %c0_19 = arith.constant 0 : index
      %48 = memref.load %arg4[%c0_18, %c0_19] : memref<1x1xf32, #tpu.memory_space<smem>>
      memref.store %47, %arg4[%c0_18, %c0_19] : memref<1x1xf32, #tpu.memory_space<smem>>
    } else {
    }
    return
  }
  func.func @transform_0(%arg0: i32) -> i32 {
    %c0_i32 = arith.constant 0 : i32
    %c0_i32_0 = arith.constant 0 : i32
    return %c0_i32 : i32
  }
  func.func @transform_1(%arg0: i32) -> (i32, i32, i32) {
    %c0_i32 = arith.constant 0 : i32
    %c0_i32_0 = arith.constant 0 : i32
    %c0_i32_1 = arith.constant 0 : i32
    return %arg0, %c0_i32, %c0_i32_0 : i32, i32, i32
  }
  func.func @transform_2(%arg0: i32) -> (i32, i32, i32) {
    %c0_i32 = arith.constant 0 : i32
    %c0_i32_0 = arith.constant 0 : i32
    %c0_i32_1 = arith.constant 0 : i32
    return %arg0, %c0_i32, %c0_i32_0 : i32, i32, i32
  }
  func.func @transform_3(%arg0: i32) -> (i32, i32) {
    %c0_i32 = arith.constant 0 : i32
    %c0_i32_0 = arith.constant 0 : i32
    %c0_i32_1 = arith.constant 0 : i32
    return %c0_i32, %c0_i32_0 : i32, i32
  }
}

module attributes {stable_mosaic.version = 11 : i64} {
  func.func @_apply_kernel(%arg0: i32, %arg1: i32, %arg2: memref<1x1xf32, #tpu.memory_space<smem>>, %arg3: memref<1x4x256xf32, #tpu.memory_space<vmem>>, %arg4: memref<1x1x256xbf16, #tpu.memory_space<vmem>>, %arg5: memref<1x4x256xf32, #tpu.memory_space<vmem>>) attributes {dimension_semantics = [#tpu.dimension_semantics<parallel>, #tpu.dimension_semantics<parallel>], iteration_bounds = array<i64: 2, 1>, scalar_prefetch = 0 : i64, scratch_operands = 0 : i64, tpu.core_type = #tpu.core_type<tc>, window_params = [{transform_indices = @transform_0, window_bounds = array<i64: 1, 1>}, {transform_indices = @transform_1, window_bounds = array<i64: 1, 4, 256>}, {transform_indices = @transform_2, window_bounds = array<i64: 1, 1, 256>}, {transform_indices = @transform_3, window_bounds = array<i64: 1, 4, 256>}]} {
    %c0 = arith.constant 0 : index
    %c0_0 = arith.constant 0 : index
    %0 = memref.load %arg2[%c0, %c0_0] : memref<1x1xf32, #tpu.memory_space<smem>>
    %cst = arith.constant 5.120000e+02 : f32
    %1 = arith.divf %cst, %0 : f32
    %c0_1 = arith.constant 0 : index
    %c0_2 = arith.constant 0 : index
    %c0_3 = arith.constant 0 : index
    %2 = vector.load %arg3[%c0_1, %c0_2, %c0_3] : memref<1x4x256xf32, #tpu.memory_space<vmem>>, vector<1x4x256xf32>
    %3 = vector.shape_cast %2 : vector<1x4x256xf32> to vector<4x256xf32>
    %c0_4 = arith.constant 0 : index
    %c0_5 = arith.constant 0 : index
    %c0_6 = arith.constant 0 : index
    %4 = vector.load %arg4[%c0_4, %c0_5, %c0_6] : memref<1x1x256xbf16, #tpu.memory_space<vmem>>, vector<1x1x256xbf16>
    %5 = vector.shape_cast %4 : vector<1x1x256xbf16> to vector<1x256xbf16>
    %6 = arith.extf %5 : vector<1x256xbf16> to vector<1x256xf32>
    %7 = vector.broadcast %6 : vector<1x256xf32> to vector<4x256xf32>
    %8 = arith.mulf %3, %7 : vector<4x256xf32>
    %9 = vector.broadcast %1 : f32 to vector<4x256xf32>
    %10 = arith.mulf %8, %9 : vector<4x256xf32>
    %c0_7 = arith.constant 0 : index
    %c0_8 = arith.constant 0 : index
    %c0_9 = arith.constant 0 : index
    %11 = vector.load %arg5[%c0_7, %c0_8, %c0_9] : memref<1x4x256xf32, #tpu.memory_space<vmem>>, vector<1x4x256xf32>
    %12 = vector.shape_cast %11 : vector<1x4x256xf32> to vector<4x256xf32>
    %13 = vector.shape_cast %10 : vector<4x256xf32> to vector<1x4x256xf32>
    tpu.vector_store %arg5[%c0_7, %c0_8, %c0_9], %13 {strides = array<i32>} : memref<1x4x256xf32, #tpu.memory_space<vmem>>, vector<1x4x256xf32>,
    return
  }
  func.func @transform_0(%arg0: i32, %arg1: i32) -> (i32, i32) {
    %c0_i32 = arith.constant 0 : i32
    %c0_i32_0 = arith.constant 0 : i32
    %c0_i32_1 = arith.constant 0 : i32
    return %c0_i32, %c0_i32_0 : i32, i32
  }
  func.func @transform_1(%arg0: i32, %arg1: i32) -> (i32, i32, i32) {
    %c0_i32 = arith.constant 0 : i32
    %c0_i32_0 = arith.constant 0 : i32
    return %arg0, %arg1, %c0_i32 : i32, i32, i32
  }
  func.func @transform_2(%arg0: i32, %arg1: i32) -> (i32, i32, i32) {
    %c0_i32 = arith.constant 0 : i32
    %c0_i32_0 = arith.constant 0 : i32
    %c0_i32_1 = arith.constant 0 : i32
    return %arg0, %c0_i32, %c0_i32_0 : i32, i32, i32
  }
  func.func @transform_3(%arg0: i32, %arg1: i32) -> (i32, i32, i32) {
    %c0_i32 = arith.constant 0 : i32
    %c0_i32_0 = arith.constant 0 : i32
    return %arg0, %arg1, %c0_i32 : i32, i32, i32
  }
}

</mosaic_0001>

<bundles_post_ra>
// kernel: dropblock_forward.3
= control target key start
LH: loop header
LB: loop body
LE: loop exit
PB: predicated region body
PF: predicated region fallthrough
CT: control target
= control target key end

     0   :  { %s456_s14 = smov 0   ;;  %s458_s15 = smov 0   ;;  %s492_s0 = inlined_call_operand.<no memory space> [shape: f32[1,1], index: 0, kind: input, shape index: {}]   ;;  %s493_s1 = inlined_call_operand.vmem [shape: f32[2,4,256], index: 1, kind: input, shape index: {}]   ;;  %s494_s2 = inlined_call_operand.vmem [shape: bf16[2,1,256], index: 2, kind: input, shape index: {}]   ;;  %s495_s3 = inlined_call_operand.vmem [shape: f32[2,4,256], index: 3, kind: output, shape index: {}]  }
   0x1   :  { %8 = sst [smem:[#allocation2]] %s492_s0  ;;  %s460_s16 = smov 0  }
   0x2 LB: > { %s26_s0 = sadd.s32 1, %s427_s15  ;;  %p371_p0 = scmp.ge.s32.totalorder %s431_s16, 1  ;;  %s431_s16 = sphi %s460_s16, %s14_s16   ;;  %s427_s15 = sphi %s458_s15, %s497_s15   ;;  %s423_s14 = sphi %s456_s14, %s496_s14  }
   0x3   : > { %p28_p1 = scmp.ge.s32.totalorder %s26_s0, 2  ;;  %p167_p2 = scmp.lt.s32.totalorder %s431_s16, 3 }
   0x5   : > { %s499_s0 = smov (%p28_p1, %s26_s0), 0  ;;  %p168_p3 = pnand %p371_p0, %p167_p2 }
   0x6   : > { %s225_s17 = sld [smem:[#allocation2]] (!%p168_p3)  ;;  %p203_p4 = scmp.lt.s32.totalorder (!%p168_p3), %s423_s14, 1 }
   0x7   : > { %171 = sbr.rel (%p168_p3) target bundleno = 86 (0x56), region = 32 }
   0xc   : > { %v226_v0 = vstv %s225_s17  ;;  %s501_s14 = smov (!%p203_p4, %s423_s14), 1  ;;  %vm256_vm4 = vcmask 1043456  }
   0xd   : > { %407 = vrcp.f32 %v226_v0  ;;  %v238_v3 = vand.u32 2147483648, %v226_v0  ;;  %vm232_vm0 = vweird.f32 %v226_v0  ;;  %v236_v5 = vand.u32 2147483647, %v226_v0  ;;  %s374_s18 = sshll.u32 %s501_s14, 1  ;;  %s379_s22 = sshll.u32 %s501_s14, 3 }
   0xe   : > { %s215_s21 = scalar_lea.vmem %s494_s2, %s374_s18  ;;  %s211_s25 = scalar_lea.vmem %s493_s1, %s379_s22 }
   0xf   : > { %v239_v7 = vor.u32 1.1754944e-38, %v238_v3  ;;  %vm237_vm3 = vcmp.eq.f32.partialorder %v236_v5, 8.507059e+37  ;;  %v244_v11 = vld [vmem:[%s215_s21] sm:$0x3]  ;;  %s224_s30 = scalar_lea.vmem %s495_s3, %s379_s22 }
  0x10   : > { %v245_v12 = vunpack.c.l.bf16 %v244_v11  ;;  %v243_v18 = vld [vmem:[%s211_s25] sm:$0xff] }
  0x12   : > { %v248_v13 = vperm.slane %v245_v12, 2  ;;  %v247_v14 = vperm.slane %v245_v12, 0 }
  0x13   : > { %v408_v1 = vpop.eup %407 }
  0x14   : > { %v228_v2 = vmul.f32 %v408_v1, %v226_v0  ;;  %vm233_vm1 = vweird.f32 %v408_v1  ;;  %v252_v15 = vperm.slane %v248_v13, 0  ;;  %v251_v16 = vperm.slane %v247_v14, 0 }
  0x15   : > { %vm234_vm2 = vmor %vm232_vm0, %vm233_vm1 }
  0x16   : > { %v229_v4 = vsub.f32 1.0, %v228_v2  ;;  %v255_v17 = vrot.slane %v252_v15, 4 }
  0x18   : > { %v230_v6 = vmul.f32 %v408_v1, %v229_v4  ;;  %v257_v19 = vsel %vm256_vm4, %v251_v16, %v255_v17 }
  0x19   : > { %v259_v20 = vmul.f32 %v257_v19, %v243_v18 }
  0x1a   : > { %v231_v8 = vadd.f32 %v408_v1, %v230_v6 }
  0x1c   : > { %v235_v9 = vsel %vm234_vm2, %v408_v1, %v231_v8 }
  0x1d   : > { %v240_v10 = vsel %vm237_vm3, %v239_v7, %v235_v9 }
  0x1e   : > { %381 = vpush %v240_v10 }
  0x4f   : > { %s382_s26 = spop %381 }
  0x50   : > { %s242_s27 = smul.f32 512.0, %s382_s26 }
  0x52   : > { %v260_v21 = vstv %s242_s27 }
  0x53   : > { %v261_v22 = vmul.f32 %v260_v21, %v259_v20 }
  0x55   : > { %262 = vst [vmem:[%s224_s30] sm:$0xff] %v261_v22 }
  0x56 PF: > { %s14_s16 = sadd.s32 1, %s431_s16   ;;  %s496_s14 = smov %s427_s15 }
  0x57   : > { %p11_p5 = scmp.ge.s32.totalorder %s14_s16, 4   ;;  %s497_s15 = smov %s499_s0 }
  0x59   :  { %13 = sbr.rel (!%p11_p5) target bundleno = 2 (0x2), region = 65 }

// kernel: dropblock_forward.2
= control target key start
LH: loop header
LB: loop body
LE: loop exit
PB: predicated region body
PF: predicated region fallthrough
CT: control target
= control target key end

     0   :  { %s525_s0 = inlined_call_operand.<no memory space> [shape: f32[1], index: 0, kind: input, shape index: {}]   ;;  %s526_s1 = inlined_call_operand.vmem [shape: f32[2,16,16], index: 1, kind: input, shape index: {}]   ;;  %s527_s2 = inlined_call_operand.vmem [shape: bf16[2,16,16], index: 2, kind: output, shape index: {0}]   ;;  %s528_s3 = inlined_call_operand.hbm [shape: f32[1,1], index: 3, kind: output, shape index: {1}]  }
   0x1   :  { %9 = sst [smem:[#allocation3]] %s525_s0 }
   0x2   :  { %10 = vsyncpa [#allocation5], 0  ;;  %s489_s14 = smov 0  }
   0x3 LB: > { %s495_s15 = sadd.s32 4294967295, %s460_s14   ;;  %p381_p0 = scmp.ge.s32.totalorder %s460_s14, 1  ;;  %s460_s14 = sphi %s489_s14, %s16_s14  }
   0x4   : > { %p137_p1 = scmp.lt.s32.totalorder %s460_s14, 3 }
   0x6   : > { %p138_p2 = pnand %p381_p0, %p137_p1 }
   0x7   : > { %p161_p3 = scmp.lt.s32.totalorder (!%p138_p2), %s495_s15, 1  ;;  %s171_s0 = sld [smem:[#allocation3]] (!%p138_p2) }
   0x8   : > { %141 = sbr.rel (%p138_p2) target bundleno = 481 (0x1e1), region = 28  ;;  %p420_p4 = scmp.eq.s32.totalorder (!%p138_p2), %s495_s15, 0 }
   0x9   : > { %s464_s25 = smov (!%p138_p2), 0.0   ;;  %s311_s29 = sshll.u32 (!%p138_p2), %s528_s3, 4  ;;  %s312_s29 = int_to_ptr.hbm [resolvable:$true] %s311_s29 }
   0xa   : > { %p421_p5 = scmp.eq.s32.totalorder (!%p138_p2), %s495_s15, 1  ;;  %s465_s5 = smov (!%p138_p2), [#allocation4]  }
   0xd   : > { %v187_v0 = vlaneseq  ;;  %s501_s16 = scalar_select %p161_p3, %s495_s15, 1  ;;  %v180_v6 = vstv %s171_s0  ;;  %v462_v10 = vmov 1.0   ;;  %vm206_vm5 = vcmask 130048  }
   0xe   : > { %v463_v14 = vmov 0.0   ;;  %vm271_vm8 = vcmask 125952   ;;  %413 = sst [smem:[#allocation2]] (%p420_p4), %s464_s25 }
   0xf   : > { %v188_v1 = vshrl.u32 %v187_v0, 7  ;;  %v191_v2 = vand.u32 127, %v187_v0  ;;  %s404_s17 = sshll.u32 %s501_s16, 4  ;;  %s405_s21 = sshll.u32 %s501_s16, 3 }
  0x10   : > { %s165_s20 = scalar_lea.vmem %s526_s1, %s404_s17  ;;  %s170_s24 = scalar_lea.vmem %s527_s2, %s405_s21 }
  0x11   : > { %v189_v3 = vadd.s32 8, %v188_v1  ;;  %v192_v4 = vsub.s32 %v188_v1, %v191_v2  ;;  %v179_v5 = vld [vmem:[%s165_s20 + $0x8] sm:$0xff]  ;;  %v178_v7 = vld [vmem:[%s165_s20] sm:$0xff]  ;;  %s274_s26 = sld [smem:[#allocation2]] }
  0x12   : > { %vm182_vm1 = vcmp.lt.f32.partialorder %v179_v5, %v180_v6  ;;  %vm181_vm2 = vcmp.lt.f32.partialorder %v178_v7, %v180_v6 }
  0x13   : > { %v193_v8 = vsub.s32 %v189_v3, %v191_v2  ;;  %vm194_vm0 = vcmp.lt.s32.totalorder %v192_v4, 0  ;;  %v195_v9 = vsub.s32 0, %v192_v4  ;;  %406 = vmatpush.msk.msra.mxu2 %vm182_vm1, %v462_v10  ;;  %391 = vmatpush.msk.msra.mxu0 %vm182_vm1, %v462_v10 }
  0x15   : > { %vm197_vm3 = vcmp.lt.s32.totalorder %v193_v8, 0  ;;  %v198_v11 = vsub.s32 0, %v193_v8  ;;  %v196_v12 = vsel %vm194_vm0, %v195_v9, %v192_v4  ;;  %407 = vmatpush.msk.msra.mxu2 %vm181_vm2, %v462_v10  ;;  %392 = vmatpush.msk.msra.mxu0 %vm181_vm2, %v462_v10 }
  0x16   : > { %vm200_vm4 = vcmp.le.s32.totalorder %v196_v12, 1 }
  0x17   : > { %v199_v13 = vsel %vm197_vm3, %v198_v11, %v193_v8  ;;  %v389_v15 = vsel %vm200_vm4, 1.0, %v463_v14 }
  0x18   : > { %vm201_vm6 = vcmp.le.s32.totalorder %v199_v13, 1  ;;  %393 = vmatmul.msk.f32.vlgmr.msra.gmra.mxu0 %vm206_vm5, %v389_v15 }
  0x19   : > { %v390_v16 = vsel %vm201_vm6, 1.0, %v463_v14  ;;  %408 = vmatpush.msk.msra.mxu3 %vm201_vm6, %v462_v10  ;;  %395 = vmatpush.msk.msra.mxu1 %vm201_vm6, %v462_v10 }
  0x1a   : > { %394 = vmatmul.msk.f32.vlgmr.msra.gmra.mxu2 %vm206_vm5, %v390_v16 }
  0x1b   : > { %409 = vmatpush.msk.msra.mxu3 %vm200_vm4, %v462_v10  ;;  %396 = vmatpush.msk.msra.mxu1 %vm200_vm4, %v462_v10 }
  0x95   : > { %v230_v17 = vpop.f32.mrf.mxu0 }
  0x96   : > { %397 = vmatmul.msk.f32.vlgmr.msra.gmra.mxu1 %vm206_vm5, %v230_v17 }
  0x9d   : > { %v233_v18 = vpop.f32.mrf.mxu2 }
  0x9e   : > { %398 = vmatmul.msk.f32.vlgmr.msra.gmra.mxu3 %vm206_vm5, %v233_v18 }
 0x113   : > { %v259_v19 = vpop.f32.mrf.mxu1 }
 0x114   : > { %vm265_vm7 = vcmp.gt.f32.partialorder %v259_v19, 0.0 }
 0x115   : > { %v267_v20 = vsel %vm265_vm7, 0.0, %v462_v10 }
 0x116   : > { %v269_v21 = vpack.c.bf16 %v267_v20, %v267_v20  ;;  %v275_v23 = vsel %vm206_vm5, %v267_v20, 0.0 }
 0x118   : > { %272 = vst.msk [vmem:[%s170_s24] sm:$0xf] %vm271_vm8, %v269_v21 }
 0x121   : > { %v262_v22 = vpop.f32.mrf.mxu3 }
 0x122   : > { %vm266_vm9 = vcmp.gt.f32.partialorder %v262_v22, 0.0 }
 0x123   : > { %v268_v24 = vsel %vm266_vm9, 0.0, %v462_v10 }
 0x124   : > { %v270_v25 = vpack.c.bf16 %v268_v24, %v268_v24  ;;  %v276_v26 = vsel %vm206_vm5, %v268_v24, 0.0 }
 0x125   : > { %v277_v27 = vadd.f32 %v276_v26, %v275_v23 }
 0x126   : > { %273 = vst.msk [vmem:[%s170_s24 + $0x4] sm:$0xf] %vm271_vm8, %v270_v25 }
 0x127   : > { %278 = vadd.xlane.f32.xlu0 %v277_v27 }
 0x19a   : > { %v279_v28 = vpop.xlane.xlu0 %278 }
 0x19b   : > { %v280_v29 = vrot.slane %v279_v28, 4 }
 0x19d   : > { %v281_v30 = vadd.f32 %v280_v29, %v279_v28 }
 0x19f   : > { %v282_v31 = vrot.slane %v281_v30, 2 }
 0x1a1   : > { %v283_v32 = vadd.f32 %v282_v31, %v281_v30 }
 0x1a3   : > { %v284_v33 = vrot.slane %v283_v32, 1 }
 0x1a5   : > { %v285_v34 = vadd.f32 %v284_v33, %v283_v32 }
 0x1a7   : > { %410 = vpush %v285_v34 }
 0x1d8   : > { %s411_s30 = spop %410 }
 0x1d9   : > { %s287_s4 = sadd.f32 %s411_s30, %s274_s26 }
 0x1db   : > { %289 = sst [smem:[#allocation2]] %s287_s4 }
 0x1dc   : > { %415 = sst [smem:[#allocation4]] (%p421_p5), %s287_s4 }
 0x1dd   : > { %417 = dma.smem_to_hbm (%p421_p5), %s465_s5, 16, %s312_s29, [#allocation5]  }
 0x1de   : > { %455 = dma.done.wait (%p421_p5), [#allocation5], 16  }
 0x1df   : > { %457 = vsyncadd (%p421_p5), [#allocation5], 4294967280 }
 0x1e0   : > { %320 = sfence }
 0x1e1 PF: > { %s16_s14 = sadd.s32 1, %s460_s14  }
 0x1e2   : > { %p13_p6 = scmp.ge.s32.totalorder %s16_s14, 4  }
 0x1e4   :  { %15 = sbr.rel (!%p13_p6) target bundleno = 3 (0x3), region = 78 }
 0x1e9   :  { %334 = vsyncpa [#allocation5], 1 }
 0x1ea   :  { %336 = vsyncpa [#allocation5 + $0x1], 1 }

</bundles_post_ra>
